<compile_context>
chip_gen: v5e
topology: v5e:2x2
jax: 0.10.0
libtpu: 0.0.40
codegen_flags: <defaults>
</compile_context>

<pallas_src>
import jax
import jax.numpy as jnp
from jax import lax
from jax.experimental import pallas as pl
from jax.experimental.pallas import tpu as pltpu

N2 = 20
LAYERS = [2 * N2, 40, 1]   # [40, 40, 1]


def mlp_kernel(x_ref, w1_ref, b1_ref, w2_ref, b2_ref, o_ref):
    # x_ref: (tb, in_dim) batch-major, exactly as stored in HBM.
    # h^T = W1 @ x^T via dot_general contracting the feature axes of both
    # operands (A @ B^T pattern) -> feature-major (hid, tb), lane-dense.
    ht = lax.dot_general(
        w1_ref[...], x_ref[...],
        dimension_numbers=(((1,), (1,)), ((), ())),
        preferred_element_type=jnp.float32)                      # (hid, tb)
    ht = jnp.tanh(ht + b1_ref[...])                               # EUP, dense lanes
    out = jnp.dot(w2_ref[...], ht,
                  preferred_element_type=jnp.float32) + b2_ref[...]  # (out, tb)
    o_ref[...] = out.astype(o_ref.dtype)


def _round_up(n, m):
    return pl.cdiv(n, m) * m


def dnn_forward(x, w1, b1, w2, b2, *, block_b=4096):
    """Forward pass of the MLP.

    x : (B, in_dim) float32          (batch-major, consumed as-is -- no transpose)
    w1: (hid, in_dim), b1: (hid,)    (torch Linear layout: (out_features, in_features))
    w2: (out_dim, hid), b2: (out_dim,)
    returns (B, out_dim) float32
    """
    B, in_dim = x.shape
    hid = w1.shape[0]
    out_dim = w2.shape[0]

    # Batch tile:
    #  * B <= 128: a single full-array block (block dims == array dims, always legal).
    #  * B  > 128: multiple of 128 (lane-dense output stores), capped at block_b,
    #    and chosen so there are >= 2 grid steps (keeps both v7x TensorCores busy
    #    under dimension_semantics=("parallel",)).
    if B <= 128:
        tb = B
    else:
        cap = _round_up(max(block_b, 128), 128)
        tb = min(cap, _round_up(pl.cdiv(B, 2), 128))
    n_steps = pl.cdiv(B, tb)

    b1_c = b1.reshape(hid, 1).astype(jnp.float32)
    b2_c = b2.reshape(out_dim, 1).astype(jnp.float32)

    flops = 2 * B * hid * (in_dim + out_dim)
    bytes_accessed = (B * (in_dim + out_dim) * 4
                      + (w1.size + w2.size + hid + out_dim) * 4)

    out_t = pl.pallas_call(
        mlp_kernel,
        out_shape=jax.ShapeDtypeStruct((out_dim, B), jnp.float32),
        grid=(n_steps,),
        in_specs=[
            # x tile: pipelined / double-buffered over the batch grid.
            pl.BlockSpec((tb, in_dim), lambda i: (i, 0)),
            # Weights & biases: constant index_map -> VMEM-resident, no re-DMA.
            pl.BlockSpec((hid, in_dim), lambda i: (0, 0)),
            pl.BlockSpec((hid, 1), lambda i: (0, 0)),
            pl.BlockSpec((out_dim, hid), lambda i: (0, 0)),
            pl.BlockSpec((out_dim, 1), lambda i: (0, 0)),
        ],
        out_specs=pl.BlockSpec((out_dim, tb), lambda i: (0, i)),
        compiler_params=pltpu.CompilerParams(
            dimension_semantics=("parallel",),
        ),
        cost_estimate=pl.CostEstimate(
            flops=flops,
            transcendentals=B * hid,
            bytes_accessed=bytes_accessed,
        ),
    )(x.astype(jnp.float32), w1.astype(jnp.float32), b1_c,
      w2.astype(jnp.float32), b2_c)

    # (out_dim, B) -> (B, out_dim); for out_dim == 1 this is layout-trivial.
    return jnp.transpose(out_t)


def xavier_uniform(key, out_features, in_features):
    # torch.nn.init.xavier_uniform_ (gain=1) on weight of shape (out, in):
    # U(-a, a), a = sqrt(6 / (fan_in + fan_out))
    a = (6.0 / (in_features + out_features)) ** 0.5
    return jax.random.uniform(key, (out_features, in_features), jnp.float32, -a, a)


def default_bias(key, out_features, in_features):
    # torch Linear default bias init: U(-1/sqrt(fan_in), 1/sqrt(fan_in))
    bound = 1.0 / (in_features ** 0.5)
    return jax.random.uniform(key, (out_features,), jnp.float32, -bound, bound)


def reference(x, w1, b1, w2, b2):
    return jnp.tanh(x @ w1.T + b1) @ w2.T + b2


if __name__ == "__main__":
    key = jax.random.PRNGKey(0)
    k_x, k_w1, k_b1, k_w2, k_b2, k_x2 = jax.random.split(key, 6)

    in_dim, hid_dim, out_dim = LAYERS   # 40, 40, 1

    # Parameters in torch (out_features, in_features) layout.
    w1 = xavier_uniform(k_w1, hid_dim, in_dim)
    b1 = default_bias(k_b1, hid_dim, in_dim)
    w2 = xavier_uniform(k_w2, out_dim, hid_dim)
    b2 = default_bias(k_b2, out_dim, hid_dim)

    # Small deterministic batch (single full-array block path).
    batch = 8
    x = jax.random.normal(k_x, (batch, in_dim), jnp.float32)
    out = dnn_forward(x, w1, b1, w2, b2)
    jax.block_until_ready(out)
    ref = reference(x, w1, b1, w2, b2)
    assert out.shape == (batch, out_dim)
    assert jnp.allclose(out, ref, atol=1e-5, rtol=1e-5), "mismatch vs reference (B=8)"

    # Multi-tile path with ragged tail (no host padding): 3 steps of 128,
    # last block only 44 valid rows.
    batch2 = 300
    x2 = jax.random.normal(k_x2, (batch2, in_dim), jnp.float32)
    out2 = dnn_forward(x2, w1, b1, w2, b2, block_b=128)
    jax.block_until_ready(out2)
    ref2 = reference(x2, w1, b1, w2, b2)
    assert out2.shape == (batch2, out_dim)
    assert jnp.allclose(out2, ref2, atol=1e-5, rtol=1e-5), "mismatch vs reference (B=300, tb=128)"

    # Default (large-tile) config on the same ragged batch: tb=256, grid=2,
    # exercising the >=2-step split used for v7x dual-TC sharding.
    out3 = dnn_forward(x2, w1, b1, w2, b2)
    jax.block_until_ready(out3)
    assert out3.shape == (batch2, out_dim)
    assert jnp.allclose(out3, ref2, atol=1e-5, rtol=1e-5), "mismatch vs reference (B=300, default tb)"

    print("KERNEL_OK")
</pallas_src>

<mosaic_0001>
module attributes {stable_mosaic.version = 11 : i64} {
  func.func @mlp_kernel(%arg0: i32, %arg1: memref<8x40xf32, #tpu.memory_space<vmem>>, %arg2: memref<40x40xf32, #tpu.memory_space<vmem>>, %arg3: memref<40x1xf32, #tpu.memory_space<vmem>>, %arg4: memref<1x40xf32, #tpu.memory_space<vmem>>, %arg5: memref<1x1xf32, #tpu.memory_space<vmem>>, %arg6: memref<1x8xf32, #tpu.memory_space<vmem>>) attributes {dimension_semantics = [#tpu.dimension_semantics<parallel>], iteration_bounds = array<i64: 1>, scalar_prefetch = 0 : i64, scratch_operands = 0 : i64, tpu.core_type = #tpu.core_type<tc>, window_params = [{transform_indices = @transform_0, window_bounds = array<i64: 8, 40>}, {pipeline_mode = #tpu.pipeline_mode<synchronous>, transform_indices = @transform_1, window_bounds = array<i64: 40, 40>}, {pipeline_mode = #tpu.pipeline_mode<synchronous>, transform_indices = @transform_2, window_bounds = array<i64: 40, 1>}, {pipeline_mode = #tpu.pipeline_mode<synchronous>, transform_indices = @transform_3, window_bounds = array<i64: 1, 40>}, {pipeline_mode = #tpu.pipeline_mode<synchronous>, transform_indices = @transform_4, window_bounds = array<i64: 1, 1>}, {transform_indices = @transform_5, window_bounds = array<i64: 1, 8>}]} {
    %c0 = arith.constant 0 : index
    %c0_0 = arith.constant 0 : index
    %0 = vector.load %arg2[%c0, %c0_0] : memref<40x40xf32, #tpu.memory_space<vmem>>, vector<40x40xf32>
    %c0_1 = arith.constant 0 : index
    %c0_2 = arith.constant 0 : index
    %1 = vector.load %arg1[%c0_1, %c0_2] : memref<8x40xf32, #tpu.memory_space<vmem>>, vector<8x40xf32>
    %cst = arith.constant dense<0.000000e+00> : vector<40x8xf32>
    %2 = tpu.matmul %0, %1, %cst {dimension_numbers = #tpu.dot_dimension_numbers<[1], [1], [0], [0], [0, 0, 1, 0], [], []>} : vector<40x40xf32>, vector<8x40xf32>, vector<40x8xf32> -> vector<40x8xf32>
    %c0_3 = arith.constant 0 : index
    %c0_4 = arith.constant 0 : index
    %3 = vector.load %arg3[%c0_3, %c0_4] : memref<40x1xf32, #tpu.memory_space<vmem>>, vector<40x1xf32>
    %4 = vector.broadcast %3 : vector<40x1xf32> to vector<40x8xf32>
    %5 = arith.addf %2, %4 : vector<40x8xf32>
    %6 = math.tanh %5 : vector<40x8xf32>
    %c0_5 = arith.constant 0 : index
    %c0_6 = arith.constant 0 : index
    %7 = vector.load %arg4[%c0_5, %c0_6] : memref<1x40xf32, #tpu.memory_space<vmem>>, vector<1x40xf32>
    %cst_7 = arith.constant dense<0.000000e+00> : vector<1x8xf32>
    %8 = tpu.matmul %7, %6, %cst_7 {dimension_numbers = #tpu.dot_dimension_numbers<[1], [0], [0], [1], [0, 0, 1, 1], [], []>} : vector<1x40xf32>, vector<40x8xf32>, vector<1x8xf32> -> vector<1x8xf32>
    %c0_8 = arith.constant 0 : index
    %c0_9 = arith.constant 0 : index
    %9 = vector.load %arg5[%c0_8, %c0_9] : memref<1x1xf32, #tpu.memory_space<vmem>>, vector<1x1xf32>
    %10 = vector.broadcast %9 : vector<1x1xf32> to vector<1x8xf32>
    %11 = arith.addf %8, %10 : vector<1x8xf32>
    %c0_10 = arith.constant 0 : index
    %c0_11 = arith.constant 0 : index
    %12 = vector.load %arg6[%c0_10, %c0_11] : memref<1x8xf32, #tpu.memory_space<vmem>>, vector<1x8xf32>
    tpu.vector_store %arg6[%c0_10, %c0_11], %11 {strides = array<i32>} : memref<1x8xf32, #tpu.memory_space<vmem>>, vector<1x8xf32>,
    return
  }
  func.func @transform_0(%arg0: i32) -> (i32, i32) {
    %c0_i32 = arith.constant 0 : i32
    %c0_i32_0 = arith.constant 0 : i32
    return %arg0, %c0_i32 : i32, i32
  }
  func.func @transform_1(%arg0: i32) -> (i32, i32) {
    %c0_i32 = arith.constant 0 : i32
    %c0_i32_0 = arith.constant 0 : i32
    %c0_i32_1 = arith.constant 0 : i32
    return %c0_i32, %c0_i32_0 : i32, i32
  }
  func.func @transform_2(%arg0: i32) -> (i32, i32) {
    %c0_i32 = arith.constant 0 : i32
    %c0_i32_0 = arith.constant 0 : i32
    %c0_i32_1 = arith.constant 0 : i32
    return %c0_i32, %c0_i32_0 : i32, i32
  }
  func.func @transform_3(%arg0: i32) -> (i32, i32) {
    %c0_i32 = arith.constant 0 : i32
    %c0_i32_0 = arith.constant 0 : i32
    %c0_i32_1 = arith.constant 0 : i32
    return %c0_i32, %c0_i32_0 : i32, i32
  }
  func.func @transform_4(%arg0: i32) -> (i32, i32) {
    %c0_i32 = arith.constant 0 : i32
    %c0_i32_0 = arith.constant 0 : i32
    %c0_i32_1 = arith.constant 0 : i32
    return %c0_i32, %c0_i32_0 : i32, i32
  }
  func.func @transform_5(%arg0: i32) -> (i32, i32) {
    %c0_i32 = arith.constant 0 : i32
    %c0_i32_0 = arith.constant 0 : i32
    return %c0_i32, %arg0 : i32, i32
  }
}

</mosaic_0001>

<bundles_post_ra>
// kernel: tpu_custom_call.1
= control target key start
LH: loop header
LB: loop body
LE: loop exit
PB: predicated region body
PF: predicated region fallthrough
CT: control target
= control target key end

     0   :  { %s340_s0 = inlined_call_operand.hbm [shape: f32[8,40], index: 0, kind: input, shape index: {}]   ;;  %s341_s1 = inlined_call_operand.vmem [shape: f32[40,40], index: 1, kind: input, shape index: {}]   ;;  %s342_s2 = inlined_call_operand.vmem [shape: f32[40,1], index: 2, kind: input, shape index: {}]   ;;  %s343_s3 = inlined_call_operand.vmem [shape: f32[1,40], index: 3, kind: input, shape index: {}]   ;;  %s344_s4 = inlined_call_operand.<no memory space> [shape: f32[1,1], index: 4, kind: input, shape index: {}]   ;;  %s345_s5 = inlined_call_operand.hbm [shape: f32[1,8], index: 5, kind: output, shape index: {}]  }
   0x1   :  { %v10_v0 = vstv %s344_s4 }
   0x2   :  { %11 = vst [vmem:[#allocation2] sm:$0x1] %v10_v0 }
   0x3   :  { %12 = vsyncpa [#allocation4], 0 }
   0x4   :  { %13 = vsyncpa [#allocation5], 0  ;;  %s19_s22 = sshll.u32 %s340_s0, 4  ;;  %s256_s23 = smov [#allocation3]   ;;  %s20_s22 = int_to_ptr.hbm [resolvable:$true] %s19_s22 }
   0x5   :  { %s21_s24 = sshll.u32 %s256_s23, 4  ;;  %s22_s24 = int_to_ptr.vmem [resolvable:$true] %s21_s24 }
   0x6   :  { %24 = dma.hbm_to_vmem [thread:$0]  %s20_s22, 128, %s22_s24, [#allocation4]  }
   0x7   :  { %252 = dma.done.wait [#allocation4], 128  }
   0x8   :  { %253 = vsyncadd [#allocation4], 4294967168  ;;  %v257_v1 = vmov 0   ;;  %vm73_vm0 = vcmask 326656   ;;  %v42_v2 = vld [vmem:[#allocation3] sm:$0xff]  ;;  %v40_v3 = vld [vmem:[%s341_s1 + $0x18] sm:$0xff] }
   0x9   :  { %191 = vset.pattern.permute.xlu0 %v257_v1  ;;  %192 = vset.pattern.permute.xlu1 %v257_v1  ;;  %v37_v4 = vld [vmem:[%s341_s1] sm:$0xff]  ;;  %v39_v6 = vld [vmem:[%s341_s1 + $0x10] sm:$0xff]  ;;  %v46_v9 = vld [vmem:[%s342_s2 + $0x18] sm:$0xff]  ;;  %s258_s18 = smov [#allocation6]   ;;  %s169_s22 = sshll.u32 %s345_s5, 4  ;;  %vm160_vm1 = vcmask 57344   ;;  %s170_s22 = int_to_ptr.hbm [resolvable:$true] %s169_s22 }
   0xa   :  { %193 = vset.pattern.permute.xlu2 %v257_v1  ;;  %187 = vmatpush.xpose.msk.msra.mxu3 %vm73_vm0, %v42_v2  ;;  %v47_v5 = vld [vmem:[%s342_s2 + $0x20] sm:$0xff]  ;;  %v45_v7 = vld [vmem:[%s342_s2 + $0x10] sm:$0xff]  ;;  %v44_v10 = vld [vmem:[%s342_s2 + $0x8] sm:$0xff]  ;;  %s167_s19 = sshll.u32 %s258_s18, 4  ;;  %s168_s19 = int_to_ptr.vmem [resolvable:$true] %s167_s19 }
   0xb   :  { %179 = vmatpush.xpose.msk.msra.mxu0 %vm73_vm0, %v42_v2  ;;  %186 = vmatpush.xpose.msk.msra.mxu2 %vm73_vm0, %v42_v2  ;;  %v43_v8 = vld [vmem:[%s342_s2] sm:$0xff]  ;;  %v38_v12 = vld [vmem:[%s341_s1 + $0x8] sm:$0xff] }
   0xc   :  { %70 = vperm.xlu0 %191, %v47_v5   ;;  %60 = vperm.xlu1 %192, %v45_v7   ;;  %v41_v11 = vld [vmem:[%s341_s1 + $0x20] sm:$0xff] }
   0xd   :  { %183 = vmatmul.msk.f32.vlgmr.msra.gmra.mxu3 %vm73_vm0, %v40_v3  ;;  %50 = vperm.xlu2 %193, %v43_v8   ;;  %v130_v13 = vld [vmem:[#allocation2] sm:$0x1] }
   0xe   :  { %180 = vmatmul.msk.f32.vlgmr.msra.gmra.mxu0 %vm73_vm0, %v37_v4  ;;  %182 = vmatmul.msk.f32.vlgmr.msra.gmra.mxu2 %vm73_vm0, %v39_v6  ;;  %v129_v33 = vld [vmem:[%s343_s3] sm:$0x1] }
  0x14   :  { %65 = vperm.xlu0 %191, %v46_v9   ;;  %55 = vperm.xlu1 %192, %v44_v10  }
  0x15   :  { %184 = vmatmul.msk.f32.gmra.mxu3 %vm73_vm0, %v41_v11  ;;  %133 = vperm.xlu2 %193, %v130_v13  }
  0x16   :  { %181 = vmatmul.msk.f32.gmra.mxu0 %vm73_vm0, %v38_v12 }
  0x67   :  { %v51_v26 = vpop.permute.xlu2 %50 }
  0x6f   :  { %v134_v35 = vpop.permute.xlu2 %133 }
  0x70   :  { %v136_v36 = vperm.slane %v134_v35, 0 }
  0x7e   :  { %v71_v14 = vpop.permute.xlu0 %70  ;;  %v61_v15 = vpop.permute.xlu1 %60 }
  0x86   :  { %v66_v18 = vpop.permute.xlu0 %65  ;;  %v56_v23 = vpop.permute.xlu1 %55 }
  0x8b   :  { %v109_v16 = vpop.f32.mrf.mxu0 }
  0x8c   :  { %v110_v28 = vadd.f32 %v109_v16, %v51_v26 }
  0x90   :  { %v118_v17 = vpop.f32.mrf.mxu3 }
  0x91   :  { %v115_v19 = vpop.f32.mrf.mxu2  ;;  %v119_v21 = vadd.f32 %v118_v17, %v66_v18 }
  0x92   :  { %v116_v25 = vadd.f32 %v115_v19, %v61_v15 }
  0x93   :  { %v112_v24 = vpop.f32.mrf.mxu0 }
  0x94   :  { %v113_v27 = vadd.f32 %v112_v24, %v56_v23 }
  0x98   :  { %v121_v20 = vpop.f32.mrf.mxu3 }
  0x99   :  { %v122_v22 = vadd.f32 %v121_v20, %v71_v14 }
  0x9b   :  { %194 = vtanh.f32 %v122_v22 }
  0x9c   :  { %196 = vtanh.f32 %v119_v21 }
  0x9d   :  { %198 = vtanh.f32 %v116_v25 }
  0x9e   :  { %200 = vtanh.f32 %v113_v27 }
  0x9f   :  { %202 = vtanh.f32 %v110_v28 }
  0xa1   :  { %v195_v29 = vpop.eup %194 }
  0xa2   :  { %151 = vmatpush.msra.mxu1 %v195_v29  ;;  %v197_v30 = vpop.eup %196 }
  0xa3   :  { %v199_v31 = vpop.eup %198 }
  0xa4   :  { %152 = vmatpush.msra.mxu1 %v197_v30  ;;  %v201_v32 = vpop.eup %200 }
  0xa5   :  { %v203_v34 = vpop.eup %202 }
  0xa6   :  { %153 = vmatpush.msra.mxu1 %v199_v31 }
  0xa8   :  { %154 = vmatpush.msra.mxu1 %v201_v32 }
  0xaa   :  { %155 = vmatpush.msra.mxu1 %v203_v34 }
  0xab   :  { %185 = vmatmul.msk.f32.vlgmr.msra.gmra.mxu1 %vm73_vm0, %v129_v33 }
 0x128   :  { %v157_v37 = vpop.f32.mrf.mxu1 }
 0x129   :  { %v158_v38 = vadd.f32 %v157_v37, %v136_v36 }
 0x12b   :  { %161 = vst.msk [vmem:[#allocation6] sm:$0x1] %vm160_vm1, %v158_v38 }
 0x12c   :  { %172 = dma.vmem_to_hbm [thread:$0]  %s168_s19, 16, %s170_s22, [#allocation5]  }
 0x12d   :  { %254 = dma.done.wait [#allocation5], 16  }
 0x12e   :  { %255 = vsyncadd [#allocation5], 4294967280 }
 0x12f   :  { %177 = vsyncpa [#allocation4], 1 }
 0x130   :  { %178 = vsyncpa [#allocation5], 1 }

</bundles_post_ra>
